<compile_context>
chip_gen: v7x
topology: tpu7x:2x2x1
jax: 0.10.0
libtpu: 0.0.40
codegen_flags: <defaults>
</compile_context>

<pallas_src>
import jax
import jax.numpy as jnp
from jax.experimental import pallas as pl
from jax.experimental.pallas import tpu as pltpu

WIDTH = 1024               # lane-dense last dim (multiple of 128)
TILE_ROWS = 1024           # (1024, 1024) f32 tile = 4 MiB per buffer
MIN_PALLAS_ELEMS = 8 * WIDTH  # need at least 8 full lane-dense rows to bother


def _linreg_kernel(w_ref, b_ref, x_ref, o_ref):
    # w_ref/b_ref: (1,) f32 scalars in SMEM; x_ref/o_ref: (block_rows, WIDTH)
    # VMEM tiles.  Compute in the input dtype (bf16-native on v6e/v7x, f32 for
    # f32 inputs); scalar casts are free / no-ops for f32.
    w = w_ref[0].astype(x_ref.dtype)
    b = b_ref[0].astype(x_ref.dtype)
    o_ref[...] = (x_ref[...] * w + b).astype(o_ref.dtype)


def linear_regression_forward(x, weight, bias, *,
                              min_pallas_elems=MIN_PALLAS_ELEMS,
                              tile_rows=TILE_ROWS):
    """x: (N, 1); weight: (1, 1) (PyTorch Linear weight); bias: (1,)."""
    n, f = x.shape
    assert f == 1 and weight.shape == (1, 1) and bias.shape == (1,)
    assert tile_rows % 8 == 0
    out_dtype = x.dtype

    # Fallback: ragged N (not a multiple of WIDTH) or tiny N.  A fused XLA FMA
    # is one HBM pass; a slab kernel for ragged N would need pad + slice (two
    # extra passes), so plain JAX wins there at any size.
    if n < min_pallas_elems or n % WIDTH != 0:
        w = weight.astype(jnp.float32)[0, 0]
        b = bias.astype(jnp.float32)[0]
        return (x.astype(jnp.float32) * w + b).astype(out_dtype)

    rows = n // WIDTH
    # Free bitcast: (N, 1) -> (rows, WIDTH); no pad, no extra HBM traffic.
    slab = x.reshape(rows, WIDTH)

    # Block shape: full extent if rows fits in one tile (satisfies the
    # "equal to full array dim" rule even when rows % 8 != 0), else a fixed
    # (tile_rows, WIDTH) tile with the ragged last block masked by Pallas.
    block_rows = min(tile_rows, rows)
    grid = (pl.cdiv(rows, block_rows),)

    w_smem = weight.reshape(1).astype(jnp.float32)
    b_smem = bias.reshape(1).astype(jnp.float32)
    itemsize = jnp.dtype(out_dtype).itemsize

    out_slab = pl.pallas_call(
        _linreg_kernel,
        out_shape=jax.ShapeDtypeStruct((rows, WIDTH), out_dtype),
        grid=grid,
        in_specs=[
            pl.BlockSpec(memory_space=pltpu.MemorySpace.SMEM),   # weight scalar
            pl.BlockSpec(memory_space=pltpu.MemorySpace.SMEM),   # bias scalar
            pl.BlockSpec((block_rows, WIDTH), lambda i: (i, 0)),  # x slab tile
        ],
        out_specs=pl.BlockSpec((block_rows, WIDTH), lambda i: (i, 0)),
        compiler_params=pltpu.CompilerParams(
            dimension_semantics=("parallel",),       # split tiles across v7x's 2 TCs
            vmem_limit_bytes=32 * 1024 * 1024,       # 16 MiB usage; safe on v5e/v6e/v7x
        ),
        cost_estimate=pl.CostEstimate(
            flops=2 * n,
            transcendentals=0,
            bytes_accessed=2 * n * itemsize,
        ),
    )(w_smem, b_smem, slab)

    # Free bitcast back to the caller's (N, 1) layout.
    return out_slab.reshape(n, 1)


if __name__ == "__main__":
    key = jax.random.PRNGKey(0)
    kx1, kx2, kx3, kw, kb = jax.random.split(key, 5)

    # nn.Linear(1, 1) parameters: weight (1, 1), bias (1,)
    weight = jax.random.normal(kw, (1, 1), dtype=jnp.float32)
    bias = jax.random.normal(kb, (1,), dtype=jnp.float32)

    def ref_fn(x):
        return x @ weight.T + bias

    # 1) Tiny / ragged batch (N=37): exercises the fused plain-JAX fast path.
    x_small = jax.random.normal(kx1, (37, 1), dtype=jnp.float32)
    y_small = jax.block_until_ready(linear_regression_forward(x_small, weight, bias))
    assert y_small.shape == (37, 1)
    assert jnp.allclose(y_small, ref_fn(x_small), atol=1e-6)

    # 2) WIDTH-aligned batch (N=8192 -> rows=8, single full-extent block):
    #    exercises the Pallas kernel with zero wrapper copies.
    x_big = jax.random.normal(kx2, (8192, 1), dtype=jnp.float32)
    y_big = jax.block_until_ready(linear_regression_forward(x_big, weight, bias))
    assert y_big.shape == (8192, 1)
    assert jnp.allclose(y_big, ref_fn(x_big), atol=1e-6)

    # 3) Multi-block with a partial (masked) last block: rows=40, tile_rows=16
    #    -> grid=3, last block half valid.  Exercises the cdiv grid + masking.
    x_part = jax.random.normal(kx3, (40 * WIDTH, 1), dtype=jnp.float32)
    y_part = jax.block_until_ready(
        linear_regression_forward(x_part, weight, bias,
                                  min_pallas_elems=WIDTH, tile_rows=16))
    assert y_part.shape == (40 * WIDTH, 1)
    assert jnp.allclose(y_part, ref_fn(x_part), atol=1e-6)

    print("KERNEL_OK")
</pallas_src>

<mosaic_0001>
module attributes {stable_mosaic.version = 11 : i64} {
  func.func @_linreg_kernel(%arg0: i32, %arg1: memref<1xf32, #tpu.memory_space<smem>>, %arg2: memref<1xf32, #tpu.memory_space<smem>>, %arg3: memref<8x1024xf32, #tpu.memory_space<vmem>>, %arg4: memref<8x1024xf32, #tpu.memory_space<vmem>>) attributes {dimension_semantics = [#tpu.dimension_semantics<parallel>], iteration_bounds = array<i64: 1>, scalar_prefetch = 0 : i64, scratch_operands = 0 : i64, tpu.core_type = #tpu.core_type<tc>, window_params = [{transform_indices = @transform_0, window_bounds = array<i64: 1>}, {transform_indices = @transform_1, window_bounds = array<i64: 1>}, {transform_indices = @transform_2, window_bounds = array<i64: 8, 1024>}, {transform_indices = @transform_3, window_bounds = array<i64: 8, 1024>}]} {
    %c0 = arith.constant 0 : index
    %0 = memref.load %arg1[%c0] : memref<1xf32, #tpu.memory_space<smem>>
    %c0_0 = arith.constant 0 : index
    %1 = memref.load %arg2[%c0_0] : memref<1xf32, #tpu.memory_space<smem>>
    %c0_1 = arith.constant 0 : index
    %c0_2 = arith.constant 0 : index
    %2 = vector.load %arg3[%c0_1, %c0_2] : memref<8x1024xf32, #tpu.memory_space<vmem>>, vector<8x1024xf32>
    %3 = vector.broadcast %0 : f32 to vector<8x1024xf32>
    %4 = arith.mulf %2, %3 : vector<8x1024xf32>
    %5 = vector.broadcast %1 : f32 to vector<8x1024xf32>
    %6 = arith.addf %4, %5 : vector<8x1024xf32>
    %c0_3 = arith.constant 0 : index
    %c0_4 = arith.constant 0 : index
    %7 = vector.load %arg4[%c0_3, %c0_4] : memref<8x1024xf32, #tpu.memory_space<vmem>>, vector<8x1024xf32>
    tpu.vector_store %arg4[%c0_3, %c0_4], %6 {strides = array<i32>} : memref<8x1024xf32, #tpu.memory_space<vmem>>, vector<8x1024xf32>,
    return
  }
  func.func @transform_0(%arg0: i32) -> i32 {
    %c0_i32 = arith.constant 0 : i32
    %c0_i32_0 = arith.constant 0 : i32
    return %c0_i32 : i32
  }
  func.func @transform_1(%arg0: i32) -> i32 {
    %c0_i32 = arith.constant 0 : i32
    %c0_i32_0 = arith.constant 0 : i32
    return %c0_i32 : i32
  }
  func.func @transform_2(%arg0: i32) -> (i32, i32) {
    %c0_i32 = arith.constant 0 : i32
    %c0_i32_0 = arith.constant 0 : i32
    return %arg0, %c0_i32 : i32, i32
  }
  func.func @transform_3(%arg0: i32) -> (i32, i32) {
    %c0_i32 = arith.constant 0 : i32
    %c0_i32_0 = arith.constant 0 : i32
    return %arg0, %c0_i32 : i32, i32
  }
}

</mosaic_0001>

<bundles_post_ra>
// kernel: tpu_custom_call.1
= control target key start
LH: loop header
LB: loop body
LE: loop exit
PB: predicated region body
PF: predicated region fallthrough
CT: control target
= control target key end

     0   :  { %10 = vsyncpa [#allocation5], 0  ;;  %s182_s0 = inlined_call_operand.<no memory space> [shape: f32[1], index: 0, kind: input, shape index: {}]   ;;  %s183_s1 = inlined_call_operand.<no memory space> [shape: f32[1], index: 1, kind: input, shape index: {}]   ;;  %s184_s2 = inlined_call_operand.hbm [shape: f32[8,1024], index: 2, kind: input, shape index: {}]   ;;  %s185_s3 = inlined_call_operand.hbm [shape: f32[8,1024], index: 3, kind: output, shape index: {}]  }
   0x1   :  { %11 = vsyncpa [#allocation6], 0  ;;  %s130_s12 = smov [#allocation4]   ;;  %s82_s16 = scalar_lea.hbm %s184_s2, 1024 }
   0x2   :  { %s22_s13 = sshll.u32 %s130_s12, 4  ;;  %p83_p0 = scmp.ne.s32.totalorder %s184_s2, %s82_s16  ;;  %s23_s13 = int_to_ptr.vmem [resolvable:$true] %s22_s13 }
   0x3   :  { %p86_p1 = scmp.lt.u32.totalorder %s82_s16, %s184_s2 }
   0x5   :  { %p88_p2 = pnand %p86_p1, %p83_p0 }
   0x7   :  { %91 = shalt.err (!%p88_p2)
}
   0x8   :  { %s92_s21 = scalar_lea.vmem %s23_s13, 1024  ;;  %p97_p4 = scmp.lt.s32.totalorder %s23_s13, %s23_s13 }
   0x9   :  { %p93_p3 = scmp.ne.s32.totalorder %s23_s13, %s92_s21  ;;  %p98_p5 = scmp.lt.s32.totalorder %s92_s21, %s92_s21 }
   0xb   :  { %p99_p6 = por %p98_p5, %p97_p4 }
   0xd   :  { %p100_p7 = pnand %p99_p6, %p93_p3 }
   0xf   :  { %103 = shalt.err (!%p100_p7)
}
  0x10   :  { %25 = dma.hbm_to_vmem [thread:$0]  %s184_s2, 1024, %s23_s13, [#allocation5]  }
  0x11   :  { %126 = dma.done.wait [#allocation5], 1024  }
  0x12   :  { %127 = vsyncadd [#allocation5], 4294966272  ;;  %v39_v0 = vstv %s182_s0  ;;  %v31_v1 = vld [vmem:[#allocation4] sm:$0xff]  ;;  %v48_v2 = vstv %s183_s1  ;;  %v32_v3 = vld [vmem:[#allocation4 + $0x8] sm:$0xff]  ;;  %s131_s0 = smov [#allocation7]  }
  0x13   :  { %v33_v4 = vld [vmem:[#allocation4 + $0x10] sm:$0xff]  ;;  %v40_v5 = vmul.f32 %v39_v0, %v31_v1  ;;  %v41_v6 = vmul.f32 %v39_v0, %v32_v3  ;;  %v34_v8 = vld [vmem:[#allocation4 + $0x18] sm:$0xff]  ;;  %v35_v9 = vld [vmem:[#allocation4 + $0x20] sm:$0xff]  ;;  %s71_s2 = sshll.u32 %s131_s0, 4  ;;  %s72_s2 = int_to_ptr.vmem [resolvable:$true] %s71_s2 }
  0x14   :  { %v42_v7 = vmul.f32 %v39_v0, %v33_v4  ;;  %v36_v10 = vld [vmem:[#allocation4 + $0x28] sm:$0xff]  ;;  %v43_v11 = vmul.f32 %v39_v0, %v34_v8  ;;  %v44_v12 = vmul.f32 %v39_v0, %v35_v9  ;;  %v37_v14 = vld [vmem:[#allocation4 + $0x30] sm:$0xff]  ;;  %v38_v15 = vld [vmem:[#allocation4 + $0x38] sm:$0xff]  ;;  %s104_s1 = scalar_lea.vmem %s72_s2, 1024  ;;  %p109_p9 = scmp.lt.s32.totalorder %s72_s2, %s72_s2 }
  0x15   :  { %v45_v13 = vmul.f32 %v39_v0, %v36_v10  ;;  %v49_v16 = vadd.f32 %v48_v2, %v40_v5  ;;  %v50_v17 = vadd.f32 %v48_v2, %v41_v6  ;;  %v46_v19 = vmul.f32 %v39_v0, %v37_v14  ;;  %p105_p8 = scmp.ne.s32.totalorder %s72_s2, %s104_s1  ;;  %p110_p10 = scmp.lt.s32.totalorder %s104_s1, %s104_s1 }
  0x16   :  { %v51_v18 = vadd.f32 %v48_v2, %v42_v7  ;;  %v52_v20 = vadd.f32 %v48_v2, %v43_v11  ;;  %v53_v21 = vadd.f32 %v48_v2, %v44_v12  ;;  %v47_v23 = vmul.f32 %v39_v0, %v38_v15 }
  0x17   :  { %v54_v22 = vadd.f32 %v48_v2, %v45_v13  ;;  %57 = vst [vmem:[#allocation7] sm:$0xff] %v49_v16  ;;  %58 = vst [vmem:[#allocation7 + $0x8] sm:$0xff] %v50_v17  ;;  %v55_v24 = vadd.f32 %v48_v2, %v46_v19  ;;  %p111_p11 = por %p110_p10, %p109_p9 }
  0x18   :  { %59 = vst [vmem:[#allocation7 + $0x10] sm:$0xff] %v51_v18  ;;  %60 = vst [vmem:[#allocation7 + $0x18] sm:$0xff] %v52_v20  ;;  %v56_v25 = vadd.f32 %v48_v2, %v47_v23 }
  0x19   :  { %61 = vst [vmem:[#allocation7 + $0x20] sm:$0xff] %v53_v21  ;;  %62 = vst [vmem:[#allocation7 + $0x28] sm:$0xff] %v54_v22  ;;  %p112_p12 = pnand %p111_p11, %p105_p8 }
  0x1a   :  { %63 = vst [vmem:[#allocation7 + $0x30] sm:$0xff] %v55_v24  ;;  %64 = vst [vmem:[#allocation7 + $0x38] sm:$0xff] %v56_v25 }
  0x1b   :  { %115 = shalt.err (!%p112_p12)
}
  0x1c   :  { %s116_s30 = scalar_lea.hbm %s185_s3, 1024 }
  0x1d   :  { %p117_p13 = scmp.ne.s32.totalorder %s185_s3, %s116_s30  ;;  %p120_p0 = scmp.lt.u32.totalorder %s116_s30, %s185_s3 }
  0x1f   :  { %p122_p1 = pnand %p120_p0, %p117_p13 }
  0x21   :  { %125 = shalt.err (!%p122_p1)
}
  0x22   :  { %74 = dma.vmem_to_hbm [thread:$0]  %s72_s2, 1024, %s185_s3, [#allocation6]  }
  0x23   :  { %128 = dma.done.wait [#allocation6], 1024  }
  0x24   :  { %129 = vsyncadd [#allocation6], 4294966272 }
  0x25   :  { %78 = vsyncpa [#allocation5], 1 }
  0x26   :  { %79 = vsyncpa [#allocation6], 1 }

</bundles_post_ra>
